<compile_context>
chip_gen: v6e
topology: v6e:2x2x1
jax: 0.10.0
libtpu: 0.0.40
codegen_flags: <defaults>
</compile_context>

<pallas_src>
import functools

import jax
import jax.numpy as jnp
from jax.experimental import pallas as pl
from jax.experimental.pallas import tpu as pltpu


def _round_up(x, m):
    return (x + m - 1) // m * m


# Conservative across v5e/v6e/v7x: 128/256-aligned tiles for the MXU, and
# double-buffered bf16 blocks stay far below v7x's 64 MiB VMEM.
_GEMM_COMPILER_PARAMS = pltpu.CompilerParams(
    dimension_semantics=("parallel", "parallel", "arbitrary"),
    vmem_limit_bytes=32 * 1024 * 1024,
)


# ----------------------------------------------------------------------------
# Pallas kernel: tiled GEMM with f32 accumulator + bias + optional ReLU
# ----------------------------------------------------------------------------
def _gemm_bias_kernel(a_ref, b_ref, bias_ref, o_ref, acc_ref, *, apply_relu):
    @pl.when(pl.program_id(2) == 0)
    def _():
        acc_ref[...] = jnp.zeros_like(acc_ref)

    acc_ref[...] += jnp.dot(a_ref[...], b_ref[...],
                            preferred_element_type=jnp.float32)

    @pl.when(pl.program_id(2) == pl.num_programs(2) - 1)
    def _():
        out = acc_ref[...] + bias_ref[...]        # bias (1, tn) broadcasts
        if apply_relu:
            out = jnp.maximum(out, 0.0)
        o_ref[...] = out.astype(o_ref.dtype)


def pallas_matmul_bias(a, b, bias, *, relu, out_dtype,
                       tm=256, tn=256, tk=512):
    """out = maybe_relu(a @ b + bias).  a:(M,K) bf16, b:(K,N) bf16, bias:(N,) f32.

    Pads M/K/N up to tile multiples (tiles clipped to the problem size), runs
    the tiled/pipelined GEMM, and slices the padding off again.
    """
    M, K = a.shape
    K2, N = b.shape
    assert K == K2, (a.shape, b.shape)

    tm = min(tm, _round_up(M, 8))
    tn = min(tn, _round_up(N, 128))
    tk = min(tk, _round_up(K, 128))
    Mp, Kp, Np = _round_up(M, tm), _round_up(K, tk), _round_up(N, tn)

    if (Mp, Kp) != (M, K):
        a = jnp.pad(a, ((0, Mp - M), (0, Kp - K)))
    if (Kp, Np) != (K, N):
        b = jnp.pad(b, ((0, Kp - K), (0, Np - N)))
    bias2d = bias.reshape(1, N)
    if Np != N:
        bias2d = jnp.pad(bias2d, ((0, 0), (0, Np - N)))

    kernel = functools.partial(_gemm_bias_kernel, apply_relu=relu)
    out = pl.pallas_call(
        kernel,
        out_shape=jax.ShapeDtypeStruct((Mp, Np), out_dtype),
        grid_spec=pltpu.PrefetchScalarGridSpec(
            num_scalar_prefetch=0,
            grid=(Mp // tm, Np // tn, Kp // tk),
            in_specs=[
                pl.BlockSpec((tm, tk), lambda i, j, k: (i, k)),
                pl.BlockSpec((tk, tn), lambda i, j, k: (k, j)),
                pl.BlockSpec((1, tn), lambda i, j, k: (0, j)),
            ],
            out_specs=pl.BlockSpec((tm, tn), lambda i, j, k: (i, j)),
            scratch_shapes=[pltpu.VMEM((tm, tn), jnp.float32)],
        ),
        compiler_params=_GEMM_COMPILER_PARAMS,
    )(a, b, bias2d)

    if (Mp, Np) != (M, N):
        out = out[:M, :N]
    return out


# ----------------------------------------------------------------------------
# Backbone: 3x3 conv, stride 2, pad 1, + ReLU (NHWC im2col + tiled Pallas GEMM)
# ----------------------------------------------------------------------------
def conv3x3_s2_relu_nhwc(x, w2d, b):
    # x: (N, H, W, Cin) bf16; w2d: (9*Cin, Cout) bf16, rows ordered (kh, kw, cin)
    n, h, w, cin = x.shape
    ho = (h + 2 - 3) // 2 + 1
    wo = (w + 2 - 3) // 2 + 1
    xp = jnp.pad(x, ((0, 0), (1, 1), (1, 1), (0, 0)))
    cols = []
    for kh in range(3):
        for kw in range(3):
            cols.append(xp[:, kh:kh + 2 * ho - 1:2, kw:kw + 2 * wo - 1:2, :])
    patches = jnp.concatenate(cols, axis=-1)            # (n, ho, wo, 9*cin)
    a = patches.reshape(n * ho * wo, 9 * cin)
    out = pallas_matmul_bias(a, w2d, b, relu=True, out_dtype=jnp.bfloat16)
    return out.reshape(n, ho, wo, -1)                   # NHWC, no transpose


# ----------------------------------------------------------------------------
# Classifier: 1x1 conv (per-pixel GEMM), class dim padded to 128 (lane-dense)
# ----------------------------------------------------------------------------
def conv1x1_nhwc(x, w2d, b):
    # x: (N, H, W, C) bf16; w2d: (C, Kpad) bf16; b: (Kpad,) f32
    n, h, w, c = x.shape
    a = x.reshape(n * h * w, c)
    out = pallas_matmul_bias(a, w2d, b, relu=False, out_dtype=jnp.float32)
    return out.reshape(n, h, w, -1)                     # (N, H, W, Kpad)


# ----------------------------------------------------------------------------
# Bilinear upsample (align_corners=False): both resize GEMMs fused per image
# ----------------------------------------------------------------------------
def _bilinear_matrix(in_size, out_size):
    # PyTorch align_corners=False half-pixel source-index rule (clamp >= 0).
    scale = in_size / out_size
    o = jnp.arange(out_size, dtype=jnp.float32)
    src = jnp.maximum((o + 0.5) * scale - 0.5, 0.0)
    i0 = jnp.clip(jnp.floor(src).astype(jnp.int32), 0, in_size - 1)
    i1 = jnp.minimum(i0 + 1, in_size - 1)
    frac = src - i0.astype(jnp.float32)
    return (jax.nn.one_hot(i0, in_size, dtype=jnp.float32) * (1.0 - frac)[:, None]
            + jax.nn.one_hot(i1, in_size, dtype=jnp.float32) * frac[:, None])


def _bilinear_kernel(x_ref, wh_ref, wwt_ref, o_ref):
    # Fused H-resize + W-resize for one (batch, class) image.  The tiny resize
    # matrices keep the same block index every step -> stay resident in VMEM.
    t = jnp.dot(wh_ref[...], x_ref[0], preferred_element_type=jnp.float32)
    o_ref[0] = jnp.dot(t, wwt_ref[...],
                       preferred_element_type=jnp.float32).astype(o_ref.dtype)


def bilinear_resize_nchw(x, out_h, out_w):
    # x: (B, C, Hi, Wi) f32 -> (B, C, out_h, out_w) f32
    bsz, c, hi, wi = x.shape
    wh = _bilinear_matrix(hi, out_h)             # (out_h, hi)
    wwt = _bilinear_matrix(wi, out_w).T          # (wi, out_w)
    imgs = x.reshape(bsz * c, hi, wi)
    out = pl.pallas_call(
        _bilinear_kernel,
        out_shape=jax.ShapeDtypeStruct((bsz * c, out_h, out_w), jnp.float32),
        grid_spec=pltpu.PrefetchScalarGridSpec(
            num_scalar_prefetch=0,
            grid=(bsz * c,),
            in_specs=[
                pl.BlockSpec((1, hi, wi), lambda i: (i, 0, 0)),
                pl.BlockSpec((out_h, hi), lambda i: (0, 0)),
                pl.BlockSpec((wi, out_w), lambda i: (0, 0)),
            ],
            out_specs=pl.BlockSpec((1, out_h, out_w), lambda i: (i, 0, 0)),
        ),
        compiler_params=pltpu.CompilerParams(
            dimension_semantics=("parallel",)),
    )(imgs, wh, wwt)
    return out.reshape(bsz, c, out_h, out_w)


# ----------------------------------------------------------------------------
# DeepLabV3.forward: features = backbone(x); x = classifier(features);
#                    x = interpolate(x, input_shape, bilinear, align=False)
# ----------------------------------------------------------------------------
def deeplabv3_forward(x, params, *, num_classes):
    in_h, in_w = x.shape[-2], x.shape[-1]
    # single entry-point layout change: NCHW -> NHWC, f32 -> bf16 for the MXU
    xh = x.transpose(0, 2, 3, 1).astype(jnp.bfloat16)
    feats = conv3x3_s2_relu_nhwc(xh, params["bb_w"], params["bb_b"])
    logits = conv1x1_nhwc(feats, params["cls_w"], params["cls_b"])  # (N,Hf,Wf,Kpad)
    # drop lane padding, go class-major for the per-image fused resize; this is
    # the only tail transpose and it is on the smallest tensor in the network.
    logits = logits[..., :num_classes].transpose(0, 3, 1, 2)        # (N,K,Hf,Wf)
    return bilinear_resize_nchw(logits, in_h, in_w)                 # (N,K,H,W)


def init_params(key, c_in, c_feat, num_classes):
    """Create torch-layout weights, then convert ONCE to TPU-friendly GEMM
    operands: bf16, im2col row order (kh, kw, cin), class dim padded to 128."""
    k1, k2, k3, k4 = jax.random.split(key, 4)
    # TODO(synk): backbone/classifier are injected modules (ResNet + DeepLabHead)
    # in torchvision DeepLabV3; deterministic small conv stand-ins used here.
    bb_w = 0.1 * jax.random.normal(k1, (c_feat, c_in, 3, 3), jnp.float32)
    bb_b = 0.1 * jax.random.normal(k2, (c_feat,), jnp.float32)
    cls_w = 0.1 * jax.random.normal(k3, (num_classes, c_feat, 1, 1), jnp.float32)
    cls_b = 0.1 * jax.random.normal(k4, (num_classes,), jnp.float32)

    kpad = _round_up(num_classes, 128)
    bb_w2d = bb_w.transpose(2, 3, 1, 0).reshape(9 * c_in, c_feat)  # (kh,kw,cin) rows
    cls_w2d = jnp.pad(cls_w.reshape(num_classes, c_feat).T,
                      ((0, 0), (0, kpad - num_classes)))
    cls_bp = jnp.pad(cls_b, (0, kpad - num_classes))
    return {
        "bb_w": bb_w2d.astype(jnp.bfloat16),
        "bb_b": bb_b.astype(jnp.float32),
        "cls_w": cls_w2d.astype(jnp.bfloat16),
        "cls_b": cls_bp.astype(jnp.float32),
    }


if __name__ == "__main__":
    N, C_IN, H, W = 2, 4, 16, 16
    C_FEAT, NUM_CLASSES = 16, 5

    key = jax.random.PRNGKey(0)
    kx, kp = jax.random.split(key)
    x = jax.random.normal(kx, (N, C_IN, H, W), jnp.float32)
    params = init_params(kp, C_IN, C_FEAT, NUM_CLASSES)

    fwd = jax.jit(deeplabv3_forward, static_argnames="num_classes")
    out = jax.block_until_ready(fwd(x, params, num_classes=NUM_CLASSES))
    assert out.shape == (N, NUM_CLASSES, H, W), out.shape
    assert out.dtype == jnp.float32
    print("KERNEL_OK")
</pallas_src>

<mosaic_0001>
module attributes {stable_mosaic.version = 11 : i64} {
  func.func @_gemm_bias_kernel(%arg0: i32, %arg1: i32, %arg2: i32, %arg3: memref<128x128xbf16, #tpu.memory_space<vmem>>, %arg4: memref<128x128xbf16, #tpu.memory_space<vmem>>, %arg5: memref<1x128xf32, #tpu.memory_space<vmem>>, %arg6: memref<128x128xbf16, #tpu.memory_space<vmem>>, %arg7: memref<128x128xf32, #tpu.memory_space<vmem>>) attributes {dimension_semantics = [#tpu.dimension_semantics<parallel>, #tpu.dimension_semantics<parallel>, #tpu.dimension_semantics<arbitrary>], iteration_bounds = array<i64: 1, 1, 1>, scalar_prefetch = 0 : i64, scratch_operands = 1 : i64, tpu.core_type = #tpu.core_type<tc>, window_params = [{transform_indices = @transform_0, window_bounds = array<i64: 128, 128>}, {transform_indices = @transform_1, window_bounds = array<i64: 128, 128>}, {transform_indices = @transform_2, window_bounds = array<i64: 1, 128>}, {transform_indices = @transform_3, window_bounds = array<i64: 128, 128>}]} {
    %c0_i32 = arith.constant 0 : i32
    %0 = arith.cmpi eq, %arg2, %c0_i32 : i32
    %1 = arith.extui %0 : i1 to i32
    %c0_i32_0 = arith.constant 0 : i32
    %2 = arith.cmpi ne, %1, %c0_i32_0 : i32
    scf.if %2 {
      %cst_10 = arith.constant 0.000000e+00 : f32
      %12 = vector.broadcast %cst_10 : f32 to vector<128x128xf32>
      %c0_11 = arith.constant 0 : index
      %c0_12 = arith.constant 0 : index
      %13 = vector.load %arg7[%c0_11, %c0_12] : memref<128x128xf32, #tpu.memory_space<vmem>>, vector<128x128xf32>
      tpu.vector_store %arg7[%c0_11, %c0_12], %12 {strides = array<i32>} : memref<128x128xf32, #tpu.memory_space<vmem>>, vector<128x128xf32>,
    } else {
    }
    %c0 = arith.constant 0 : index
    %c0_1 = arith.constant 0 : index
    %3 = vector.load %arg7[%c0, %c0_1] : memref<128x128xf32, #tpu.memory_space<vmem>>, vector<128x128xf32>
    %c0_2 = arith.constant 0 : index
    %c0_3 = arith.constant 0 : index
    %4 = vector.load %arg3[%c0_2, %c0_3] : memref<128x128xbf16, #tpu.memory_space<vmem>>, vector<128x128xbf16>
    %c0_4 = arith.constant 0 : index
    %c0_5 = arith.constant 0 : index
    %5 = vector.load %arg4[%c0_4, %c0_5] : memref<128x128xbf16, #tpu.memory_space<vmem>>, vector<128x128xbf16>
    %cst = arith.constant dense<0.000000e+00> : vector<128x128xf32>
    %6 = tpu.matmul %4, %5, %cst {dimension_numbers = #tpu.dot_dimension_numbers<[1], [0], [0], [1], [0, 0, 1, 1], [], []>} : vector<128x128xbf16>, vector<128x128xbf16>, vector<128x128xf32> -> vector<128x128xf32>
    %7 = arith.addf %3, %6 : vector<128x128xf32>
    %c0_6 = arith.constant 0 : index
    %c0_7 = arith.constant 0 : index
    %8 = vector.load %arg7[%c0_6, %c0_7] : memref<128x128xf32, #tpu.memory_space<vmem>>, vector<128x128xf32>
    tpu.vector_store %arg7[%c0_6, %c0_7], %7 {strides = array<i32>} : memref<128x128xf32, #tpu.memory_space<vmem>>, vector<128x128xf32>,
    %c0_i32_8 = arith.constant 0 : i32
    %9 = arith.cmpi eq, %arg2, %c0_i32_8 : i32
    %10 = arith.extui %9 : i1 to i32
    %c0_i32_9 = arith.constant 0 : i32
    %11 = arith.cmpi ne, %10, %c0_i32_9 : i32
    scf.if %11 {
      %c0_10 = arith.constant 0 : index
      %c0_11 = arith.constant 0 : index
      %12 = vector.load %arg7[%c0_10, %c0_11] : memref<128x128xf32, #tpu.memory_space<vmem>>, vector<128x128xf32>
      %c0_12 = arith.constant 0 : index
      %c0_13 = arith.constant 0 : index
      %13 = vector.load %arg5[%c0_12, %c0_13] : memref<1x128xf32, #tpu.memory_space<vmem>>, vector<1x128xf32>
      %14 = vector.broadcast %13 : vector<1x128xf32> to vector<128x128xf32>
      %15 = arith.addf %12, %14 : vector<128x128xf32>
      %cst_14 = arith.constant 0.000000e+00 : f32
      %16 = vector.broadcast %cst_14 : f32 to vector<128x128xf32>
      %17 = arith.maximumf %15, %16 : vector<128x128xf32>
      %18 = arith.truncf %17 : vector<128x128xf32> to vector<128x128xbf16>
      %c0_15 = arith.constant 0 : index
      %c0_16 = arith.constant 0 : index
      %19 = vector.load %arg6[%c0_15, %c0_16] : memref<128x128xbf16, #tpu.memory_space<vmem>>, vector<128x128xbf16>
      tpu.vector_store %arg6[%c0_15, %c0_16], %18 {strides = array<i32>} : memref<128x128xbf16, #tpu.memory_space<vmem>>, vector<128x128xbf16>,
    } else {
    }
    return
  }
  func.func @transform_0(%arg0: i32, %arg1: i32, %arg2: i32) -> (i32, i32) {
    %c0_i32 = arith.constant 0 : i32
    return %arg0, %arg2 : i32, i32
  }
  func.func @transform_1(%arg0: i32, %arg1: i32, %arg2: i32) -> (i32, i32) {
    %c0_i32 = arith.constant 0 : i32
    return %arg2, %arg1 : i32, i32
  }
  func.func @transform_2(%arg0: i32, %arg1: i32, %arg2: i32) -> (i32, i32) {
    %c0_i32 = arith.constant 0 : i32
    %c0_i32_0 = arith.constant 0 : i32
    return %c0_i32, %arg1 : i32, i32
  }
  func.func @transform_3(%arg0: i32, %arg1: i32, %arg2: i32) -> (i32, i32) {
    %c0_i32 = arith.constant 0 : i32
    return %arg0, %arg1 : i32, i32
  }
}

module attributes {stable_mosaic.version = 11 : i64} {
  func.func @_gemm_bias_kernel(%arg0: i32, %arg1: i32, %arg2: i32, %arg3: memref<128x128xbf16, #tpu.memory_space<vmem>>, %arg4: memref<128x128xbf16, #tpu.memory_space<vmem>>, %arg5: memref<1x128xf32, #tpu.memory_space<vmem>>, %arg6: memref<128x128xf32, #tpu.memory_space<vmem>>, %arg7: memref<128x128xf32, #tpu.memory_space<vmem>>) attributes {dimension_semantics = [#tpu.dimension_semantics<parallel>, #tpu.dimension_semantics<parallel>, #tpu.dimension_semantics<arbitrary>], iteration_bounds = array<i64: 1, 1, 1>, scalar_prefetch = 0 : i64, scratch_operands = 1 : i64, tpu.core_type = #tpu.core_type<tc>, window_params = [{transform_indices = @transform_0, window_bounds = array<i64: 128, 128>}, {transform_indices = @transform_1, window_bounds = array<i64: 128, 128>}, {transform_indices = @transform_2, window_bounds = array<i64: 1, 128>}, {transform_indices = @transform_3, window_bounds = array<i64: 128, 128>}]} {
    %c0_i32 = arith.constant 0 : i32
    %0 = arith.cmpi eq, %arg2, %c0_i32 : i32
    %1 = arith.extui %0 : i1 to i32
    %c0_i32_0 = arith.constant 0 : i32
    %2 = arith.cmpi ne, %1, %c0_i32_0 : i32
    scf.if %2 {
      %cst_10 = arith.constant 0.000000e+00 : f32
      %12 = vector.broadcast %cst_10 : f32 to vector<128x128xf32>
      %c0_11 = arith.constant 0 : index
      %c0_12 = arith.constant 0 : index
      %13 = vector.load %arg7[%c0_11, %c0_12] : memref<128x128xf32, #tpu.memory_space<vmem>>, vector<128x128xf32>
      tpu.vector_store %arg7[%c0_11, %c0_12], %12 {strides = array<i32>} : memref<128x128xf32, #tpu.memory_space<vmem>>, vector<128x128xf32>,
    } else {
    }
    %c0 = arith.constant 0 : index
    %c0_1 = arith.constant 0 : index
    %3 = vector.load %arg7[%c0, %c0_1] : memref<128x128xf32, #tpu.memory_space<vmem>>, vector<128x128xf32>
    %c0_2 = arith.constant 0 : index
    %c0_3 = arith.constant 0 : index
    %4 = vector.load %arg3[%c0_2, %c0_3] : memref<128x128xbf16, #tpu.memory_space<vmem>>, vector<128x128xbf16>
    %c0_4 = arith.constant 0 : index
    %c0_5 = arith.constant 0 : index
    %5 = vector.load %arg4[%c0_4, %c0_5] : memref<128x128xbf16, #tpu.memory_space<vmem>>, vector<128x128xbf16>
    %cst = arith.constant dense<0.000000e+00> : vector<128x128xf32>
    %6 = tpu.matmul %4, %5, %cst {dimension_numbers = #tpu.dot_dimension_numbers<[1], [0], [0], [1], [0, 0, 1, 1], [], []>} : vector<128x128xbf16>, vector<128x128xbf16>, vector<128x128xf32> -> vector<128x128xf32>
    %7 = arith.addf %3, %6 : vector<128x128xf32>
    %c0_6 = arith.constant 0 : index
    %c0_7 = arith.constant 0 : index
    %8 = vector.load %arg7[%c0_6, %c0_7] : memref<128x128xf32, #tpu.memory_space<vmem>>, vector<128x128xf32>
    tpu.vector_store %arg7[%c0_6, %c0_7], %7 {strides = array<i32>} : memref<128x128xf32, #tpu.memory_space<vmem>>, vector<128x128xf32>,
    %c0_i32_8 = arith.constant 0 : i32
    %9 = arith.cmpi eq, %arg2, %c0_i32_8 : i32
    %10 = arith.extui %9 : i1 to i32
    %c0_i32_9 = arith.constant 0 : i32
    %11 = arith.cmpi ne, %10, %c0_i32_9 : i32
    scf.if %11 {
      %c0_10 = arith.constant 0 : index
      %c0_11 = arith.constant 0 : index
      %12 = vector.load %arg7[%c0_10, %c0_11] : memref<128x128xf32, #tpu.memory_space<vmem>>, vector<128x128xf32>
      %c0_12 = arith.constant 0 : index
      %c0_13 = arith.constant 0 : index
      %13 = vector.load %arg5[%c0_12, %c0_13] : memref<1x128xf32, #tpu.memory_space<vmem>>, vector<1x128xf32>
      %14 = vector.broadcast %13 : vector<1x128xf32> to vector<128x128xf32>
      %15 = arith.addf %12, %14 : vector<128x128xf32>
      %c0_14 = arith.constant 0 : index
      %c0_15 = arith.constant 0 : index
      %16 = vector.load %arg6[%c0_14, %c0_15] : memref<128x128xf32, #tpu.memory_space<vmem>>, vector<128x128xf32>
      tpu.vector_store %arg6[%c0_14, %c0_15], %15 {strides = array<i32>} : memref<128x128xf32, #tpu.memory_space<vmem>>, vector<128x128xf32>,
    } else {
    }
    return
  }
  func.func @transform_0(%arg0: i32, %arg1: i32, %arg2: i32) -> (i32, i32) {
    %c0_i32 = arith.constant 0 : i32
    return %arg0, %arg2 : i32, i32
  }
  func.func @transform_1(%arg0: i32, %arg1: i32, %arg2: i32) -> (i32, i32) {
    %c0_i32 = arith.constant 0 : i32
    return %arg2, %arg1 : i32, i32
  }
  func.func @transform_2(%arg0: i32, %arg1: i32, %arg2: i32) -> (i32, i32) {
    %c0_i32 = arith.constant 0 : i32
    %c0_i32_0 = arith.constant 0 : i32
    return %c0_i32, %arg1 : i32, i32
  }
  func.func @transform_3(%arg0: i32, %arg1: i32, %arg2: i32) -> (i32, i32) {
    %c0_i32 = arith.constant 0 : i32
    return %arg0, %arg1 : i32, i32
  }
}

module attributes {stable_mosaic.version = 11 : i64} {
  func.func @_bilinear_kernel(%arg0: i32, %arg1: memref<1x8x8xf32, #tpu.memory_space<vmem>>, %arg2: memref<16x8xf32, #tpu.memory_space<vmem>>, %arg3: memref<8x16xf32, #tpu.memory_space<vmem>>, %arg4: memref<1x16x16xf32, #tpu.memory_space<vmem>>) attributes {dimension_semantics = [#tpu.dimension_semantics<parallel>], iteration_bounds = array<i64: 10>, scalar_prefetch = 0 : i64, scratch_operands = 0 : i64, tpu.core_type = #tpu.core_type<tc>, window_params = [{transform_indices = @transform_0, window_bounds = array<i64: 1, 8, 8>}, {pipeline_mode = #tpu.pipeline_mode<synchronous>, transform_indices = @transform_1, window_bounds = array<i64: 16, 8>}, {pipeline_mode = #tpu.pipeline_mode<synchronous>, transform_indices = @transform_2, window_bounds = array<i64: 8, 16>}, {transform_indices = @transform_3, window_bounds = array<i64: 1, 16, 16>}]} {
    %c0 = arith.constant 0 : index
    %c0_0 = arith.constant 0 : index
    %0 = vector.load %arg2[%c0, %c0_0] : memref<16x8xf32, #tpu.memory_space<vmem>>, vector<16x8xf32>
    %c0_1 = arith.constant 0 : index
    %c0_2 = arith.constant 0 : index
    %c0_3 = arith.constant 0 : index
    %1 = vector.load %arg1[%c0_1, %c0_2, %c0_3] : memref<1x8x8xf32, #tpu.memory_space<vmem>>, vector<1x8x8xf32>
    %2 = vector.shape_cast %1 : vector<1x8x8xf32> to vector<8x8xf32>
    %cst = arith.constant dense<0.000000e+00> : vector<16x8xf32>
    %3 = tpu.matmul %0, %2, %cst {dimension_numbers = #tpu.dot_dimension_numbers<[1], [0], [0], [1], [0, 0, 1, 1], [], []>} : vector<16x8xf32>, vector<8x8xf32>, vector<16x8xf32> -> vector<16x8xf32>
    %c0_4 = arith.constant 0 : index
    %c0_5 = arith.constant 0 : index
    %4 = vector.load %arg3[%c0_4, %c0_5] : memref<8x16xf32, #tpu.memory_space<vmem>>, vector<8x16xf32>
    %cst_6 = arith.constant dense<0.000000e+00> : vector<16x16xf32>
    %5 = tpu.matmul %3, %4, %cst_6 {dimension_numbers = #tpu.dot_dimension_numbers<[1], [0], [0], [1], [0, 0, 1, 1], [], []>} : vector<16x8xf32>, vector<8x16xf32>, vector<16x16xf32> -> vector<16x16xf32>
    %c0_7 = arith.constant 0 : index
    %c0_8 = arith.constant 0 : index
    %c0_9 = arith.constant 0 : index
    %6 = vector.load %arg4[%c0_7, %c0_8, %c0_9] : memref<1x16x16xf32, #tpu.memory_space<vmem>>, vector<1x16x16xf32>
    %7 = vector.shape_cast %6 : vector<1x16x16xf32> to vector<16x16xf32>
    %8 = vector.shape_cast %5 : vector<16x16xf32> to vector<1x16x16xf32>
    tpu.vector_store %arg4[%c0_7, %c0_8, %c0_9], %8 {strides = array<i32>} : memref<1x16x16xf32, #tpu.memory_space<vmem>>, vector<1x16x16xf32>,
    return
  }
  func.func @transform_0(%arg0: i32) -> (i32, i32, i32) {
    %c0_i32 = arith.constant 0 : i32
    %c0_i32_0 = arith.constant 0 : i32
    %c0_i32_1 = arith.constant 0 : i32
    return %arg0, %c0_i32, %c0_i32_0 : i32, i32, i32
  }
  func.func @transform_1(%arg0: i32) -> (i32, i32) {
    %c0_i32 = arith.constant 0 : i32
    %c0_i32_0 = arith.constant 0 : i32
    %c0_i32_1 = arith.constant 0 : i32
    return %c0_i32, %c0_i32_0 : i32, i32
  }
  func.func @transform_2(%arg0: i32) -> (i32, i32) {
    %c0_i32 = arith.constant 0 : i32
    %c0_i32_0 = arith.constant 0 : i32
    %c0_i32_1 = arith.constant 0 : i32
    return %c0_i32, %c0_i32_0 : i32, i32
  }
  func.func @transform_3(%arg0: i32) -> (i32, i32, i32) {
    %c0_i32 = arith.constant 0 : i32
    %c0_i32_0 = arith.constant 0 : i32
    %c0_i32_1 = arith.constant 0 : i32
    return %arg0, %c0_i32, %c0_i32_0 : i32, i32, i32
  }
}

</mosaic_0001>

<bundles_post_ra>
// kernel: deeplabv3_forward.3
= control target key start
LH: loop header
LB: loop body
LE: loop exit
PB: predicated region body
PF: predicated region fallthrough
CT: control target
= control target key end

     0   :  { %s721_s1 = inlined_call_operand.vmem [shape: bf16[128,128], index: 1, kind: input, shape index: {}]   ;;  %s722_s0 = inlined_call_operand.vmem [shape: bf16[128,128], index: 0, kind: input, shape index: {}]   ;;  %s723_s2 = inlined_call_operand.vmem [shape: f32[1,128], index: 2, kind: input, shape index: {}]   ;;  %s724_s3 = inlined_call_operand.vmem [shape: bf16[128,128], index: 3, kind: output, shape index: {}]  }
   0x1   :  { %v610_v0 = vld [vmem:[%s721_s1 + $0x38] sm:$0xff]   ;;  %v611_v1 = vld [vmem:[%s721_s1 + $0x30] sm:$0xff]   ;;  %v612_v2 = vld [vmem:[%s721_s1 + $0x28] sm:$0xff]  }
   0x2   :  { %562 = vmatprep.subr.bf16.mxu0 %v610_v0  ;;  %594 = vmatprep.subr.bf16.mxu1 %v610_v0  ;;  %v613_v3 = vld [vmem:[%s721_s1 + $0x20] sm:$0xff]   ;;  %v614_v6 = vld [vmem:[%s721_s1 + $0x18] sm:$0xff]   ;;  %v615_v7 = vld [vmem:[%s721_s1 + $0x10] sm:$0xff]  }
   0x3   :  { %563 = vmatpush3.bf16.msra.mxu0 %v610_v0  ;;  %602 = vmatpush3.bf16.msra.mxu1 %v610_v0  ;;  %v618_v4 = vld [vmem:[%s722_s0] sm:$0xff]   ;;  %v616_v8 = vld [vmem:[%s721_s1 + $0x8] sm:$0xff]   ;;  %v622_v12 = vld [vmem:[%s722_s0 + $0x10] sm:$0xff]  }
   0x4   :  { %564 = vmatprep.subr.bf16.mxu0 %v611_v1  ;;  %595 = vmatprep.subr.bf16.mxu1 %v611_v1  ;;  %v619_v5 = vld [vmem:[%s722_s0 + $0x20] sm:$0xff]   ;;  %v620_v10 = vld [vmem:[%s722_s0 + $0x8] sm:$0xff]   ;;  %v623_v13 = vld [vmem:[%s722_s0 + $0x30] sm:$0xff]  }
   0x5   :  { %578 = vmatprep.mubr.bf16.mxu0 %v618_v4  ;;  %586 = vmatprep.mubr.bf16.mxu1 %v619_v5  ;;  %v617_v9 = vld [vmem:[%s721_s1] sm:$0xff]   ;;  %v621_v11 = vld [vmem:[%s722_s0 + $0x28] sm:$0xff]   ;;  %v624_v14 = vld [vmem:[%s722_s0 + $0x18] sm:$0xff]  }
   0x6   :  { %v625_v15 = vld [vmem:[%s722_s0 + $0x38] sm:$0xff]   ;;  %v466_v16 = vld [vmem:[%s723_s2] ss:$0 sm:$0xff] }
   0x7   :  { %565 = vmatpush3.bf16.msra.mxu0 %v611_v1  ;;  %603 = vmatpush3.bf16.msra.mxu1 %v611_v1 }
   0x8   :  { %566 = vmatprep.subr.bf16.mxu0 %v612_v2  ;;  %596 = vmatprep.subr.bf16.mxu1 %v612_v2 }
   0xb   :  { %567 = vmatpush3.bf16.msra.mxu0 %v612_v2  ;;  %604 = vmatpush3.bf16.msra.mxu1 %v612_v2 }
   0xc   :  { %568 = vmatprep.subr.bf16.mxu0 %v613_v3  ;;  %597 = vmatprep.subr.bf16.mxu1 %v613_v3 }
   0xf   :  { %569 = vmatpush3.bf16.msra.mxu0 %v613_v3  ;;  %605 = vmatpush3.bf16.msra.mxu1 %v613_v3 }
  0x10   :  { %570 = vmatprep.subr.bf16.mxu0 %v614_v6  ;;  %598 = vmatprep.subr.bf16.mxu1 %v614_v6 }
  0x13   :  { %571 = vmatpush3.bf16.msra.mxu0 %v614_v6  ;;  %606 = vmatpush3.bf16.msra.mxu1 %v614_v6 }
  0x14   :  { %572 = vmatprep.subr.bf16.mxu0 %v615_v7  ;;  %599 = vmatprep.subr.bf16.mxu1 %v615_v7 }
  0x17   :  { %573 = vmatpush3.bf16.msra.mxu0 %v615_v7  ;;  %607 = vmatpush3.bf16.msra.mxu1 %v615_v7 }
  0x18   :  { %574 = vmatprep.subr.bf16.mxu0 %v616_v8  ;;  %600 = vmatprep.subr.bf16.mxu1 %v616_v8 }
  0x1b   :  { %575 = vmatpush3.bf16.msra.mxu0 %v616_v8  ;;  %608 = vmatpush3.bf16.msra.mxu1 %v616_v8 }
  0x1c   :  { %576 = vmatprep.subr.bf16.mxu0 %v617_v9  ;;  %601 = vmatprep.subr.bf16.mxu1 %v617_v9 }
  0x1f   :  { %577 = vmatpush3.bf16.msra.mxu0 %v617_v9  ;;  %609 = vmatpush3.bf16.msra.mxu1 %v617_v9 }
  0x22   :  { %579 = vmatmul.mubr.bf16.vlgmr.msra.gmra.mxu0 %v620_v10  ;;  %587 = vmatmul.mubr.bf16.vlgmr.msra.gmra.mxu1 %v621_v11 }
  0x23   :  { %582 = vmatprep.mubr.bf16.mxu0 %v622_v12  ;;  %590 = vmatprep.mubr.bf16.mxu1 %v623_v13 }
  0x2a   :  { %583 = vmatmul.mubr.bf16.gmra.mxu0 %v624_v14  ;;  %591 = vmatmul.mubr.bf16.gmra.mxu1 %v625_v15 }
  0xe2   :  { %v580_v17 = vpop.f32.mrf.mxu0  ;;  %v588_v18 = vpop.f32.mrf.mxu1 }
  0xe3   :  { %v336_v19 = vadd.f32 %v580_v17, %v466_v16  ;;  %v344_v20 = vadd.f32 %v588_v18, %v466_v16 }
  0xe4   :  { %v213_v21 = vpop.f32.mrf.mxu0  ;;  %v245_v22 = vpop.f32.mrf.mxu1 }
  0xe5   :  { %v334_v23 = vadd.f32 %v466_v16, %v213_v21  ;;  %v342_v24 = vadd.f32 %v466_v16, %v245_v22  ;;  %v352_v29 = vmax.f32 %v336_v19, 0.0  ;;  %v360_v30 = vmax.f32 %v344_v20, 0.0 }
  0xe6   :  { %v581_v25 = vpop.f32.mrf.mxu0  ;;  %v589_v26 = vpop.f32.mrf.mxu1 }
  0xe7   :  { %v337_v27 = vadd.f32 %v581_v25, %v466_v16  ;;  %v345_v28 = vadd.f32 %v589_v26, %v466_v16  ;;  %v350_v37 = vmax.f32 %v334_v23, 0.0  ;;  %v358_v38 = vmax.f32 %v342_v24, 0.0 }
  0xe8   :  { %v216_v31 = vpop.f32.mrf.mxu0  ;;  %v248_v32 = vpop.f32.mrf.mxu1 }
  0xe9   :  { %v353_v33 = vmax.f32 %v337_v27, 0.0  ;;  %v361_v34 = vmax.f32 %v345_v28, 0.0  ;;  %v335_v35 = vadd.f32 %v466_v16, %v216_v31  ;;  %v343_v36 = vadd.f32 %v466_v16, %v248_v32 }
  0xea   :  { %v584_v39 = vpop.f32.mrf.mxu0  ;;  %v592_v40 = vpop.f32.mrf.mxu1 }
  0xeb   :  { %v507_v41 = vpack.c.bf16 %v353_v33, %v352_v29  ;;  %v527_v42 = vpack.c.bf16 %v361_v34, %v360_v30  ;;  %v351_v43 = vmax.f32 %v335_v35, 0.0  ;;  %v359_v44 = vmax.f32 %v343_v36, 0.0 }
  0xec   :  { %v340_v45 = vadd.f32 %v584_v39, %v466_v16  ;;  %v348_v46 = vadd.f32 %v592_v40, %v466_v16  ;;  %v229_v47 = vpop.f32.mrf.mxu0  ;;  %v261_v48 = vpop.f32.mrf.mxu1 }
  0xed   :  { %539 = vst [vmem:[%s724_s3 + $0x8] sm:$0xff] %v507_v41   ;;  %543 = vst [vmem:[%s724_s3 + $0x28] sm:$0xff] %v527_v42   ;;  %v502_v49 = vpack.c.bf16 %v351_v43, %v350_v37  ;;  %v522_v50 = vpack.c.bf16 %v359_v44, %v358_v38  ;;  %v338_v51 = vadd.f32 %v466_v16, %v229_v47 }
  0xee   :  { %v346_v52 = vadd.f32 %v466_v16, %v261_v48  ;;  %v585_v53 = vpop.f32.mrf.mxu0  ;;  %v593_v54 = vpop.f32.mrf.mxu1  ;;  %v356_v57 = vmax.f32 %v340_v45, 0.0  ;;  %v364_v58 = vmax.f32 %v348_v46, 0.0 }
  0xef   :  { %503 = vst [vmem:[%s724_s3] sm:$0xff] %v502_v49   ;;  %542 = vst [vmem:[%s724_s3 + $0x20] sm:$0xff] %v522_v50   ;;  %v341_v55 = vadd.f32 %v585_v53, %v466_v16  ;;  %v349_v56 = vadd.f32 %v593_v54, %v466_v16  ;;  %v354_v1 = vmax.f32 %v338_v51, 0.0 }
  0xf0   :  { %v232_v59 = vpop.f32.mrf.mxu0  ;;  %v264_v60 = vpop.f32.mrf.mxu1  ;;  %v362_v2 = vmax.f32 %v346_v52, 0.0 }
  0xf1   :  { %v357_v61 = vmax.f32 %v341_v55, 0.0  ;;  %v365_v62 = vmax.f32 %v349_v56, 0.0  ;;  %v339_v63 = vadd.f32 %v466_v16, %v232_v59  ;;  %v347_v0 = vadd.f32 %v466_v16, %v264_v60 }
  0xf3   :  { %v517_v3 = vpack.c.bf16 %v357_v61, %v356_v57  ;;  %v537_v4 = vpack.c.bf16 %v365_v62, %v364_v58  ;;  %v355_v5 = vmax.f32 %v339_v63, 0.0  ;;  %v363_v6 = vmax.f32 %v347_v0, 0.0 }
  0xf5   :  { %541 = vst [vmem:[%s724_s3 + $0x18] sm:$0xff] %v517_v3   ;;  %545 = vst [vmem:[%s724_s3 + $0x38] sm:$0xff] %v537_v4   ;;  %v512_v7 = vpack.c.bf16 %v355_v5, %v354_v1  ;;  %v532_v8 = vpack.c.bf16 %v363_v6, %v362_v2 }
  0xf7   :  { %540 = vst [vmem:[%s724_s3 + $0x10] sm:$0xff] %v512_v7   ;;  %544 = vst [vmem:[%s724_s3 + $0x30] sm:$0xff] %v532_v8  }

// kernel: deeplabv3_forward.4
= control target key start
LH: loop header
LB: loop body
LE: loop exit
PB: predicated region body
PF: predicated region fallthrough
CT: control target
= control target key end

     0   :  { %s586_s1 = inlined_call_operand.vmem [shape: bf16[128,128], index: 1, kind: input, shape index: {}]   ;;  %s587_s0 = inlined_call_operand.vmem [shape: bf16[128,128], index: 0, kind: input, shape index: {}]   ;;  %s588_s2 = inlined_call_operand.vmem [shape: f32[1,128], index: 2, kind: input, shape index: {}]   ;;  %s589_s3 = inlined_call_operand.vmem [shape: f32[128,128], index: 3, kind: output, shape index: {}]  }
   0x1   :  { %v451_v0 = vld [vmem:[%s586_s1 + $0x38] sm:$0xff]   ;;  %v452_v1 = vld [vmem:[%s586_s1 + $0x30] sm:$0xff]   ;;  %v453_v2 = vld [vmem:[%s586_s1 + $0x28] sm:$0xff]  }
   0x2   :  { %403 = vmatprep.subr.bf16.mxu0 %v451_v0  ;;  %435 = vmatprep.subr.bf16.mxu1 %v451_v0  ;;  %v454_v3 = vld [vmem:[%s586_s1 + $0x20] sm:$0xff]   ;;  %v455_v6 = vld [vmem:[%s586_s1 + $0x18] sm:$0xff]   ;;  %v456_v7 = vld [vmem:[%s586_s1 + $0x10] sm:$0xff]  }
   0x3   :  { %404 = vmatpush3.bf16.msra.mxu0 %v451_v0  ;;  %443 = vmatpush3.bf16.msra.mxu1 %v451_v0  ;;  %v459_v4 = vld [vmem:[%s587_s0] sm:$0xff]   ;;  %v457_v8 = vld [vmem:[%s586_s1 + $0x8] sm:$0xff]   ;;  %v463_v12 = vld [vmem:[%s587_s0 + $0x10] sm:$0xff]  }
   0x4   :  { %405 = vmatprep.subr.bf16.mxu0 %v452_v1  ;;  %436 = vmatprep.subr.bf16.mxu1 %v452_v1  ;;  %v460_v5 = vld [vmem:[%s587_s0 + $0x20] sm:$0xff]   ;;  %v461_v10 = vld [vmem:[%s587_s0 + $0x8] sm:$0xff]   ;;  %v464_v13 = vld [vmem:[%s587_s0 + $0x30] sm:$0xff]  }
   0x5   :  { %419 = vmatprep.mubr.bf16.mxu0 %v459_v4  ;;  %427 = vmatprep.mubr.bf16.mxu1 %v460_v5  ;;  %v458_v9 = vld [vmem:[%s586_s1] sm:$0xff]   ;;  %v462_v11 = vld [vmem:[%s587_s0 + $0x28] sm:$0xff]   ;;  %v465_v14 = vld [vmem:[%s587_s0 + $0x18] sm:$0xff]  }
   0x6   :  { %v466_v15 = vld [vmem:[%s587_s0 + $0x38] sm:$0xff]   ;;  %v386_v16 = vld [vmem:[%s588_s2] ss:$0 sm:$0xff] }
   0x7   :  { %406 = vmatpush3.bf16.msra.mxu0 %v452_v1  ;;  %444 = vmatpush3.bf16.msra.mxu1 %v452_v1 }
   0x8   :  { %407 = vmatprep.subr.bf16.mxu0 %v453_v2  ;;  %437 = vmatprep.subr.bf16.mxu1 %v453_v2 }
   0xb   :  { %408 = vmatpush3.bf16.msra.mxu0 %v453_v2  ;;  %445 = vmatpush3.bf16.msra.mxu1 %v453_v2 }
   0xc   :  { %409 = vmatprep.subr.bf16.mxu0 %v454_v3  ;;  %438 = vmatprep.subr.bf16.mxu1 %v454_v3 }
   0xf   :  { %410 = vmatpush3.bf16.msra.mxu0 %v454_v3  ;;  %446 = vmatpush3.bf16.msra.mxu1 %v454_v3 }
  0x10   :  { %411 = vmatprep.subr.bf16.mxu0 %v455_v6  ;;  %439 = vmatprep.subr.bf16.mxu1 %v455_v6 }
  0x13   :  { %412 = vmatpush3.bf16.msra.mxu0 %v455_v6  ;;  %447 = vmatpush3.bf16.msra.mxu1 %v455_v6 }
  0x14   :  { %413 = vmatprep.subr.bf16.mxu0 %v456_v7  ;;  %440 = vmatprep.subr.bf16.mxu1 %v456_v7 }
  0x17   :  { %414 = vmatpush3.bf16.msra.mxu0 %v456_v7  ;;  %448 = vmatpush3.bf16.msra.mxu1 %v456_v7 }
  0x18   :  { %415 = vmatprep.subr.bf16.mxu0 %v457_v8  ;;  %441 = vmatprep.subr.bf16.mxu1 %v457_v8 }
  0x1b   :  { %416 = vmatpush3.bf16.msra.mxu0 %v457_v8  ;;  %449 = vmatpush3.bf16.msra.mxu1 %v457_v8 }
  0x1c   :  { %417 = vmatprep.subr.bf16.mxu0 %v458_v9  ;;  %442 = vmatprep.subr.bf16.mxu1 %v458_v9 }
  0x1f   :  { %418 = vmatpush3.bf16.msra.mxu0 %v458_v9  ;;  %450 = vmatpush3.bf16.msra.mxu1 %v458_v9 }
  0x22   :  { %420 = vmatmul.mubr.bf16.vlgmr.msra.gmra.mxu0 %v461_v10  ;;  %428 = vmatmul.mubr.bf16.vlgmr.msra.gmra.mxu1 %v462_v11 }
  0x23   :  { %423 = vmatprep.mubr.bf16.mxu0 %v463_v12  ;;  %431 = vmatprep.mubr.bf16.mxu1 %v464_v13 }
  0x2a   :  { %424 = vmatmul.mubr.bf16.gmra.mxu0 %v465_v14  ;;  %432 = vmatmul.mubr.bf16.gmra.mxu1 %v466_v15 }
  0xe2   :  { %v421_v17 = vpop.f32.mrf.mxu0  ;;  %v429_v18 = vpop.f32.mrf.mxu1 }
  0xe3   :  { %v336_v19 = vadd.f32 %v421_v17, %v386_v16  ;;  %v344_v20 = vadd.f32 %v429_v18, %v386_v16 }
  0xe4   :  { %v213_v21 = vpop.f32.mrf.mxu0  ;;  %v245_v22 = vpop.f32.mrf.mxu1 }
  0xe5   :  { %352 = vst [vmem:[%s589_s3 + $0x10] sm:$0xff] %v336_v19  ;;  %360 = vst [vmem:[%s589_s3 + $0x50] sm:$0xff] %v344_v20  ;;  %v334_v23 = vadd.f32 %v386_v16, %v213_v21  ;;  %v342_v24 = vadd.f32 %v386_v16, %v245_v22 }
  0xe6   :  { %v422_v25 = vpop.f32.mrf.mxu0  ;;  %v430_v26 = vpop.f32.mrf.mxu1 }
  0xe7   :  { %350 = vst [vmem:[%s589_s3] sm:$0xff] %v334_v23  ;;  %358 = vst [vmem:[%s589_s3 + $0x40] sm:$0xff] %v342_v24  ;;  %v337_v27 = vadd.f32 %v422_v25, %v386_v16  ;;  %v345_v28 = vadd.f32 %v430_v26, %v386_v16 }
  0xe8   :  { %v216_v29 = vpop.f32.mrf.mxu0  ;;  %v248_v30 = vpop.f32.mrf.mxu1 }
  0xe9   :  { %353 = vst [vmem:[%s589_s3 + $0x18] sm:$0xff] %v337_v27  ;;  %361 = vst [vmem:[%s589_s3 + $0x58] sm:$0xff] %v345_v28  ;;  %v335_v31 = vadd.f32 %v386_v16, %v216_v29  ;;  %v343_v32 = vadd.f32 %v386_v16, %v248_v30 }
  0xea   :  { %v425_v33 = vpop.f32.mrf.mxu0  ;;  %v433_v34 = vpop.f32.mrf.mxu1 }
  0xeb   :  { %351 = vst [vmem:[%s589_s3 + $0x8] sm:$0xff] %v335_v31  ;;  %359 = vst [vmem:[%s589_s3 + $0x48] sm:$0xff] %v343_v32  ;;  %v340_v35 = vadd.f32 %v425_v33, %v386_v16  ;;  %v348_v36 = vadd.f32 %v433_v34, %v386_v16 }
  0xec   :  { %v229_v37 = vpop.f32.mrf.mxu0  ;;  %v261_v38 = vpop.f32.mrf.mxu1 }
  0xed   :  { %356 = vst [vmem:[%s589_s3 + $0x30] sm:$0xff] %v340_v35  ;;  %364 = vst [vmem:[%s589_s3 + $0x70] sm:$0xff] %v348_v36  ;;  %v338_v39 = vadd.f32 %v386_v16, %v229_v37  ;;  %v346_v40 = vadd.f32 %v386_v16, %v261_v38 }
  0xee   :  { %v426_v41 = vpop.f32.mrf.mxu0  ;;  %v434_v42 = vpop.f32.mrf.mxu1 }
  0xef   :  { %354 = vst [vmem:[%s589_s3 + $0x20] sm:$0xff] %v338_v39  ;;  %362 = vst [vmem:[%s589_s3 + $0x60] sm:$0xff] %v346_v40  ;;  %v341_v43 = vadd.f32 %v426_v41, %v386_v16  ;;  %v349_v44 = vadd.f32 %v434_v42, %v386_v16 }
  0xf0   :  { %v232_v45 = vpop.f32.mrf.mxu0  ;;  %v264_v46 = vpop.f32.mrf.mxu1 }
  0xf1   :  { %357 = vst [vmem:[%s589_s3 + $0x38] sm:$0xff] %v341_v43  ;;  %365 = vst [vmem:[%s589_s3 + $0x78] sm:$0xff] %v349_v44  ;;  %v339_v47 = vadd.f32 %v386_v16, %v232_v45  ;;  %v347_v48 = vadd.f32 %v386_v16, %v264_v46 }
  0xf3   :  { %355 = vst [vmem:[%s589_s3 + $0x28] sm:$0xff] %v339_v47  ;;  %363 = vst [vmem:[%s589_s3 + $0x68] sm:$0xff] %v347_v48 }

// kernel: deeplabv3_forward.5
= control target key start
LH: loop header
LB: loop body
LE: loop exit
PB: predicated region body
PF: predicated region fallthrough
CT: control target
= control target key end

     0   :  { %8 = vsyncpa [#allocation3], 0  ;;  %s685_s0 = inlined_call_operand.vmem [shape: f32[10,8,8], index: 0, kind: input, shape index: {}]   ;;  %s686_s1 = inlined_call_operand.vmem [shape: f32[16,8], index: 1, kind: input, shape index: {}]   ;;  %s687_s2 = inlined_call_operand.vmem [shape: f32[8,16], index: 2, kind: input, shape index: {}]   ;;  %s688_s3 = inlined_call_operand.hbm [shape: f32[10,16,16], index: 3, kind: output, shape index: {}]  }
   0x1   :  { %10 = vsyncpa [#allocation3 + $0x1], 0  ;;  %s570_s12 = smov 0   ;;  %s572_s13 = smov 0  }
   0x2   :  { %s574_s14 = smov 0   ;;  %s576_s15 = smov 0  }
   0x3 LB: > { %s591_s16 = sadd.s32 4294967295, %s545_s15   ;;  %s412_s17 = sadd.s32 4294967294, %s545_s15   ;;  %s545_s15 = sphi %s576_s15, %s694_s15   ;;  %s541_s14 = sphi %s574_s14, %s693_s14   ;;  %s537_s13 = sphi %s572_s13, %s692_s13   ;;  %s533_s12 = sphi %s570_s12, %s691_s12  }
   0x4   : > { %s595_s18 = sadd.s32 1, %s545_s15   ;;  %s91_s19 = sadd.s32 1, %s541_s14 }
   0x5   : > { %s88_s20 = ssub.s32 %s545_s15, %s595_s18  ;;  %p101_p0 = scmp.ne.s32.totalorder %s541_s14, %s537_s13 }
   0x6   : > { %p89_p1 = scmp.eq.s32.totalorder %s88_s20, 0  ;;  %p102_p2 = scmp.eq.s32.totalorder %s591_s16, 9 }
   0x7   : > { %p107_p3 = scmp.ne.s32.totalorder %s537_s13, %s533_s12  ;;  %p108_p4 = scmp.eq.s32.totalorder %s412_s17, 9 }
   0x8   : > { %s606_s21 = scalar_select %p89_p1, %s541_s14, %s91_s19  }
   0x9   : > { %p608_p5 = por %p102_p2, %p101_p0  ;;  %p612_p6 = por %p108_p4, %p107_p3 }
   0xa   : > { %p415_p7 = scmp.ge.s32.totalorder %s545_s15, 1  ;;  %p139_p8 = scmp.lt.s32.totalorder %s545_s15, 11 }
   0xc   : > { %p140_p9 = pnand %p415_p7, %p139_p8 }
   0xd   : > { %p162_p10 = scmp.lt.s32.totalorder (!%p140_p9), %s591_s16, 9  ;;  %s159_s8 = sand.u32 (!%p140_p9), 1, %s537_s13  }
   0xe   : > { %143 = sbr.rel (%p140_p9) target bundleno = 431 (0x1af), region = 32  ;;  %s416_s9 = sshll.u32 (!%p140_p9), %s159_s8, 4 }
   0xf   : > { %s161_s10 = scalar_lea.vmem (!%p140_p9), [#allocation2], %s416_s9  ;;  %s427_s17 = sshll.u32 (!%p140_p9), %s591_s16, 8 }
  0x10   : > { %s350_s11 = sshll.u32 (!%p140_p9), %s161_s10, 4  ;;  %s643_s24 = scalar_lea.hbm (!%p140_p9), %s688_s3, %s427_s17  ;;  %s638_s11 = int_to_ptr.vmem [resolvable:$true] %s350_s11 }
  0x11   : > { %s645_s25 = scalar_lea.sflag (!%p140_p9), [#allocation3], %s159_s8 }
  0x13   : > { %v166_v0 = vld [vmem:[%s686_s1] sm:$0xff]  ;;  %vm169_vm0 = vcmask 64512   ;;  %s163_s26 = scalar_select %p162_p10, %s591_s16, 9  ;;  %v167_v2 = vld [vmem:[%s686_s1 + $0x8] sm:$0xff]  ;;  %vm333_vm1 = vcmask 130048  }
  0x14   : > { %436 = vmatprep.mubr.msk.f32.mxu0 %vm169_vm0, %v166_v0  ;;  %v251_v3 = vld [vmem:[%s687_s2] sm:$0xff]  ;;  %s547_s16 = smov [#allocation2]  }
  0x15   : > { %s417_s27 = sshll.u32 %s163_s26, 3  ;;  %439 = vmatprep.subr.mxu1 %v251_v3  ;;  %s485_s26 = scalar_lea.vmem %s638_s11, 256 }
  0x16   : > { %s165_s30 = scalar_lea.vmem %s685_s0, %s417_s27  ;;  %440 = vmatpush3.msra.mxu1 %v251_v3  ;;  %p486_p11 = scmp.ne.s32.totalorder %s638_s11, %s485_s26 }
  0x17   : > { %v168_v1 = vld [vmem:[%s165_s30] sm:$0xff]  ;;  %s489_s27 = sshll.u32 %s547_s16, 4  ;;  %s490_s27 = int_to_ptr.vmem [resolvable:$false] %s489_s27 }
  0x18   : > { %434 = vmatprep.subr.mxu0 %v168_v1  ;;  %p487_p12 = pnand %p486_p11, %p608_p5  ;;  %s491_s28 = scalar_lea.vmem %s490_s27, 512 }
  0x19   : > { %435 = vmatpush3.msra.mxu0 %v168_v1  ;;  %p492_p0 = scmp.lt.s32.totalorder %s638_s11, %s490_s27  ;;  %p493_p1 = scmp.lt.s32.totalorder %s491_s28, %s485_s26 }
  0x1a   : > { %437 = vmatmul.mubr.msk.f32.vlgmr.msra.gmra.mxu0 %vm169_vm0, %v167_v2  ;;  %p488_p13 = pneg %p487_p12 }
  0x1b   : > { %p494_p2 = por %p493_p1, %p492_p0 }
  0x1d   : > { %p495_p3 = pnand %p494_p2, %p488_p13 }
  0xda   : > { %v438_v4 = vpop.f32.mrf.mxu0 }
  0xdc   : > { %v242_v5 = vpop.f32.mrf.mxu0 }
  0xdd   : > { %441 = vmatprep.mubr.msk.f32.mxu1 %vm169_vm0, %v242_v5 }
  0xde   : > { %442 = vmatmul.mubr.msk.f32.vlgmr.msra.gmra.mxu1 %vm169_vm0, %v438_v4 }
 0x19e   : > { %v443_v6 = vpop.f32.mrf.mxu1 }
 0x19f   : > { %335 = vst.msk [vmem:[%s161_s10 + $0x8] sm:$0xff] %vm333_vm1, %v443_v6 }
 0x1a0   : > { %v324_v7 = vpop.f32.mrf.mxu1 }
 0x1a1   : > { %334 = vst.msk [vmem:[%s161_s10] sm:$0xff] %vm333_vm1, %v324_v7 }
 0x1a2   : > { %498 = shalt.err (!%p495_p3)
}
 0x1a3   : > { %s499_s29 = scalar_lea.hbm %s643_s24, 256  ;;  %s503_s5 = scalar_lea.hbm %s688_s3, 2560 }
 0x1a4   : > { %p500_p4 = scmp.ne.s32.totalorder %s643_s24, %s499_s29  ;;  %p504_p9 = scmp.lt.s32.totalorder %s643_s24, %s688_s3 }
 0x1a5   : > { %p505_p10 = scmp.lt.s32.totalorder %s503_s5, %s499_s29 }
 0x1a6   : > { %p501_p7 = pnand %p500_p4, %p608_p5 }
 0x1a7   : > { %p506_p11 = por %p505_p10, %p504_p9 }
 0x1a8   : > { %p502_p8 = pneg %p501_p7 }
 0x1aa   : > { %p507_p12 = pnand %p506_p11, %p502_p8 }
 0x1ac   : > { %510 = shalt.err (!%p507_p12)
}
 0x1ad   : > { %s548_s8 = smov 128   ;;  %s549_s9 = smov 8  }
 0x1ae   : > { %444 = dma.vmem_to_hbm [thread:$0]  (%p608_p5), %s638_s11, 256, %s643_s24, %s645_s25, %s548_s8, %s548_s8, %s549_s9  }
 0x1af PF: > { %p450_p13 = scmp.ge.s32.totalorder %s545_s15, 2  ;;  %s365_s10 = sand.u32 1, %s533_s12  }
 0x1b0   : > { %s366_s17 = scalar_lea.sflag [#allocation3], %s365_s10 }
 0x1b1   : > { %p447_p0 = pnand %p450_p13, %p612_p6 }
 0x1b3   : > { %p448_p1 = pneg %p447_p0 }
 0x1b5   : > { %528 = dma.done.wait (%p448_p1), %s366_s17, 256  }
 0x1b6   : > { %530 = vsyncadd (%p448_p1), %s366_s17, 4294967040  ;;  %p13_p2 = scmp.ge.s32.totalorder %s595_s18, 12   ;;  %s691_s12 = smov %s537_s13 }
 0x1b7   : > { %s692_s13 = smov %s541_s14  ;;  %s693_s14 = smov %s606_s21 }
 0x1b8   : > { %s694_s15 = smov %s595_s18  ;;  %15 = sbr.rel (!%p13_p2) target bundleno = 3 (0x3), region = 67 }
 0x1bd   :  { %371 = vsyncpa [#allocation3], 1 }
 0x1be   :  { %373 = vsyncpa [#allocation3 + $0x1], 1 }

</bundles_post_ra>
